<compile_context>
chip_gen: v6e
topology: v6e:2x2x1
jax: 0.10.0
libtpu: 0.0.40
codegen_flags: <defaults>
</compile_context>

<pallas_src>
import jax
import jax.numpy as jnp
from jax.experimental import pallas as pl
from jax.experimental.pallas import tpu as pltpu


def _round_up(x, m):
    return ((x + m - 1) // m) * m


def _vmem_capacity_bytes():
    try:
        return int(pltpu.get_tpu_info().vmem_capacity_bytes)
    except Exception:
        return 64 * 1024 * 1024  # conservative default (v7x per-core VMEM)


def _pick_tile_c(c, max_tile=512):
    """Largest divisor of C that is a multiple of 8 and <= max_tile (C itself if small
    or no such divisor).  >1 channel tiles => 'parallel' axis for v7x megacore."""
    if c <= max_tile:
        return c
    best = None
    t = 8
    while t <= max_tile:
        if c % t == 0:
            best = t
        t += 8
    return best if best is not None else c


def _pick_tile_hw(b, cin, hw, tile_c, compute_bytes, budget_bytes):
    """Largest spatial tile (multiple of 128 lanes) whose *padded* VMEM residency fits
    the budget: double-buffered x block, conv/ReLU intermediate, weight tile, lane-
    padded accumulator and output block."""
    cin_pad = _round_up(cin, 8)                       # sublane padding of the x block
    hw_cap = _round_up(hw, 128)
    # grid-invariant-ish residents (lane-padded to 128 where the minor dim is small)
    const = (2 * tile_c * 128 * compute_bytes         # weight tile, double-buffered
             + 3 * tile_c * 128 * 4)                  # acc scratch + gf out block (x2)
    best = 128
    t = 128
    while t <= hw_cap:
        foot = (const
                + 2 * b * cin_pad * t * 4             # x block f32, double-buffered
                + tile_c * t * (4 + compute_bytes))   # conv intermediate (f32 + cast)
        if foot <= budget_bytes:
            best = t
            t += 128
        else:
            break
    return min(best, hw_cap)


# ---------------------------------------------------------------------------------
# Kernel 1: 1x1-conv backbone stub (MXU) + ReLU + global average pool.
# grid = (C tiles [parallel], HW tiles [arbitrary / reduction]).
# ---------------------------------------------------------------------------------
def _make_pool_kernel(batch, hw_total, compute_dtype):
    inv_hw = 1.0 / float(hw_total)   # true HW (padding contributes zero to the sum)

    def kernel(x_ref, wt_ref, gf_ref, acc_ref):
        i = pl.program_id(1)         # spatial reduction axis (last grid axis)

        @pl.when(i == 0)
        def _init():
            acc_ref[...] = jnp.zeros_like(acc_ref)

        wt = wt_ref[...]                                     # (tile_c, Cin), compute dtype
        cols = []
        for b in range(batch):                               # small static batch unroll
            xb = x_ref[b].astype(compute_dtype)              # (Cin, tile_hw), lane-dense
            fb = jnp.dot(wt, xb,
                         preferred_element_type=jnp.float32)  # MXU, f32 accumulation
            fb = jnp.maximum(fb, 0.0)                         # ReLU
            cols.append(jnp.sum(fb, axis=1, keepdims=True))   # (tile_c, 1) partial pool
        acc_ref[...] += jnp.concatenate(cols, axis=1)         # (tile_c, B) full store

        @pl.when(i == pl.num_programs(1) - 1)
        def _finalize():
            gf_ref[...] = (acc_ref[...] * inv_hw).astype(gf_ref.dtype)

    return kernel


def conv_relu_gap(x_bcs, w_base_t, *, tile_hw=None, tile_c=None):
    """x_bcs: (B, Cin, HW) f32 (free reshape of NCHW).  w_base_t: (C, Cin), compute dtype.
    Returns gf_cb: (C, B) f32 — channel-major global-average-pooled feature."""
    B, Cin, HW = x_bcs.shape
    C = w_base_t.shape[0]
    compute_dtype = w_base_t.dtype
    compute_bytes = jnp.dtype(compute_dtype).itemsize

    cap = _vmem_capacity_bytes()
    budget = min(cap // 2, 48 * 1024 * 1024)          # generation-aware tile budget
    vmem_limit = min((cap * 3) // 4, 100 * 1024 * 1024)

    if tile_c is None:
        tile_c = _pick_tile_c(C)
    assert C % tile_c == 0 and (tile_c % 8 == 0 or tile_c == C)
    if tile_hw is None:
        tile_hw = _pick_tile_hw(B, Cin, HW, tile_c, compute_bytes, budget)
    assert tile_hw % 128 == 0 or tile_hw == HW

    hw_pad = _round_up(HW, tile_hw)
    if hw_pad != HW:
        # zero columns flow through conv -> ReLU -> sum as exact zeros
        x_bcs = jnp.pad(x_bcs, ((0, 0), (0, 0), (0, hw_pad - HW)))

    kernel = _make_pool_kernel(B, HW, compute_dtype)
    grid = (C // tile_c, hw_pad // tile_hw)

    return pl.pallas_call(
        kernel,
        out_shape=jax.ShapeDtypeStruct((C, B), jnp.float32),
        grid_spec=pltpu.PrefetchScalarGridSpec(
            num_scalar_prefetch=0,
            grid=grid,
            in_specs=[
                pl.BlockSpec((B, Cin, tile_hw), lambda j, i: (0, 0, i)),
                pl.BlockSpec((tile_c, Cin), lambda j, i: (j, 0)),
            ],
            out_specs=pl.BlockSpec((tile_c, B), lambda j, i: (j, 0)),
            scratch_shapes=[pltpu.VMEM((tile_c, B), jnp.float32)],
        ),
        compiler_params=pltpu.CompilerParams(
            dimension_semantics=("parallel", "arbitrary"),
            vmem_limit_bytes=int(vmem_limit),
        ),
    )(x_bcs, w_base_t)


# ---------------------------------------------------------------------------------
# Kernel 2: bnneck (batch-stat BatchNorm1d) + bias-free classifier, on the tiny
# pooled feature only.  Keeping the classifier weight out of kernel 1 frees its
# (double-buffered) VMEM residency there — the key v7x concern from the review.
# ---------------------------------------------------------------------------------
def _make_head_kernel(eps, compute_dtype):
    def kernel(gf_ref, gamma_ref, beta_ref, wcls_ref, cls_ref):
        gf = gf_ref[...]                                        # (C, B) f32
        mean = jnp.mean(gf, axis=1, keepdims=True)              # batch statistics
        var = jnp.mean((gf - mean) ** 2, axis=1, keepdims=True)
        feat_bn = (gf - mean) * jax.lax.rsqrt(var + eps) \
            * gamma_ref[...] + beta_ref[...]                    # (C, B)
        cls_ref[...] = jnp.dot(
            wcls_ref[...], feat_bn.astype(compute_dtype),
            preferred_element_type=jnp.float32).astype(cls_ref.dtype)   # (NC, B)
    return kernel


def bnneck_classifier(gf_cb, gamma_c1, beta_c1, w_cls, *, eps=1e-5):
    """gf_cb: (C, B) f32; w_cls: (NC, C) compute dtype (PyTorch-native layout).
    Returns cls_t: (NC, B) f32."""
    _, B = gf_cb.shape
    NC = w_cls.shape[0]
    return pl.pallas_call(
        _make_head_kernel(eps, w_cls.dtype),
        out_shape=jax.ShapeDtypeStruct((NC, B), jnp.float32),
    )(gf_cb, gamma_c1, beta_c1, w_cls)


# ---------------------------------------------------------------------------------
# Wrapper: Region_Baseline forward (training mode, neck='bnneck').
# ---------------------------------------------------------------------------------
def prepare_params(params, compute_dtype=jnp.bfloat16):
    """One-time cast / relayout of the invariant weights (review: no per-call casts)."""
    return {
        "w_base_t": params["w_base"].T.astype(compute_dtype),      # (C, Cin)
        "bn_gamma": params["bn_gamma"].reshape(-1, 1).astype(jnp.float32),  # (C, 1)
        "bn_beta": params["bn_beta"].reshape(-1, 1).astype(jnp.float32),    # (C, 1)
        "w_cls": params["w_cls"].astype(compute_dtype),            # (NC, C) torch layout
    }


def region_baseline_forward(x_nchw, kparams, *, tile_hw=None, tile_c=None):
    B, Cin, H, W = x_nchw.shape
    x = x_nchw.reshape(B, Cin, H * W)          # FREE reshape of NCHW — no transpose
    gf_cb = conv_relu_gap(x, kparams["w_base_t"],
                          tile_hw=tile_hw, tile_c=tile_c)          # (C, B)
    cls_t = bnneck_classifier(gf_cb, kparams["bn_gamma"],
                              kparams["bn_beta"], kparams["w_cls"])  # (NC, B)
    # only head-sized (C,B)/(NC,B) arrays get transposed here — negligible glue
    return cls_t.T, gf_cb.T                    # (cls_score (B,NC), global_feat (B,C))


def init_params(key, cin, in_planes, num_classes):
    k1, k2 = jax.random.split(key)
    # kaiming fan_in init for the 1x1-conv stand-in: std = sqrt(2 / fan_in)
    w_base = jax.random.normal(k1, (cin, in_planes), jnp.float32) * jnp.sqrt(2.0 / cin)
    # BatchNorm1d (bnneck): weight=1, bias=0 (weights_init_kaiming)
    bn_gamma = jnp.ones((in_planes,), jnp.float32)
    bn_beta = jnp.zeros((in_planes,), jnp.float32)
    # classifier Linear(in_planes, num_classes, bias=False), std=0.001
    w_cls = jax.random.normal(k2, (num_classes, in_planes), jnp.float32) * 0.001
    return {"w_base": w_base, "bn_gamma": bn_gamma, "bn_beta": bn_beta, "w_cls": w_cls}


# --------------------------- pure-JAX f32 references ------------------------------
def _reference_gf(x_nchw, params):
    B, Cin, H, W = x_nchw.shape
    x_flat = jnp.transpose(x_nchw, (0, 2, 3, 1)).reshape(B * H * W, Cin)
    fm = jnp.maximum(x_flat @ params["w_base"], 0.0).reshape(B, H * W, -1)
    return jnp.mean(fm, axis=1)                                   # (B, C)


def _reference_head(gf, params, eps=1e-5):
    mean = jnp.mean(gf, axis=0, keepdims=True)
    var = jnp.mean((gf - mean) ** 2, axis=0, keepdims=True)
    feat = (gf - mean) * jax.lax.rsqrt(var + eps) * params["bn_gamma"] + params["bn_beta"]
    return feat @ params["w_cls"].T                               # (B, NC)


if __name__ == "__main__":
    B, Cin, H, W = 2, 4, 16, 16
    in_planes = 32       # scaled-down stand-in for the module's 2048
    num_classes = 8

    key = jax.random.PRNGKey(0)
    kx, kp = jax.random.split(key)
    x = jax.random.normal(kx, (B, Cin, H, W), jnp.float32)
    params = init_params(kp, Cin, in_planes, num_classes)
    ref_gf = _reference_gf(x, params)

    # --- f32 path: exact semantics; tile_hw=128 exercises init/accumulate/finalize ---
    kp_f32 = prepare_params(params, jnp.float32)
    cls_f32, gf_f32 = region_baseline_forward(x, kp_f32, tile_hw=128)
    jax.block_until_ready((cls_f32, gf_f32))
    assert cls_f32.shape == (B, num_classes) and gf_f32.shape == (B, in_planes)
    assert jnp.allclose(gf_f32, ref_gf, atol=5e-3, rtol=5e-3)
    assert jnp.allclose(cls_f32, _reference_head(gf_f32, params), atol=1e-4, rtol=1e-2)

    # --- bf16 path (default perf config, auto tile picker) ---
    kp_bf16 = prepare_params(params, jnp.bfloat16)
    cls_bf, gf_bf = region_baseline_forward(x, kp_bf16)
    jax.block_until_ready((cls_bf, gf_bf))
    assert cls_bf.shape == (B, num_classes) and gf_bf.shape == (B, in_planes)
    assert jnp.allclose(gf_bf, ref_gf, atol=3e-2, rtol=3e-2)
    assert jnp.allclose(cls_bf, _reference_head(gf_bf, params), atol=2e-4, rtol=5e-2)
    assert bool(jnp.all(jnp.isfinite(cls_bf)))

    print("KERNEL_OK")
</pallas_src>

<mosaic_0001>
module attributes {stable_mosaic.version = 11 : i64} {
  func.func @kernel(%arg0: i32, %arg1: i32, %arg2: memref<2x4x128xf32, #tpu.memory_space<vmem>>, %arg3: memref<32x4xf32, #tpu.memory_space<vmem>>, %arg4: memref<32x2xf32, #tpu.memory_space<vmem>>, %arg5: memref<32x2xf32, #tpu.memory_space<vmem>>) attributes {dimension_semantics = [#tpu.dimension_semantics<parallel>, #tpu.dimension_semantics<arbitrary>], iteration_bounds = array<i64: 1, 2>, scalar_prefetch = 0 : i64, scratch_operands = 1 : i64, tpu.core_type = #tpu.core_type<tc>, window_params = [{transform_indices = @transform_0, window_bounds = array<i64: 2, 4, 128>}, {transform_indices = @transform_1, window_bounds = array<i64: 32, 4>}, {transform_indices = @transform_2, window_bounds = array<i64: 32, 2>}]} {
    %c0_i32 = arith.constant 0 : i32
    %0 = arith.cmpi eq, %arg1, %c0_i32 : i32
    %1 = arith.extui %0 : i1 to i32
    %c0_i32_0 = arith.constant 0 : i32
    %2 = arith.cmpi ne, %1, %c0_i32_0 : i32
    scf.if %2 {
      %cst_17 = arith.constant 0.000000e+00 : f32
      %25 = vector.broadcast %cst_17 : f32 to vector<32x2xf32>
      %c0_18 = arith.constant 0 : index
      %c0_19 = arith.constant 0 : index
      %26 = vector.load %arg5[%c0_18, %c0_19] : memref<32x2xf32, #tpu.memory_space<vmem>>, vector<32x2xf32>
      tpu.vector_store %arg5[%c0_18, %c0_19], %25 {strides = array<i32>} : memref<32x2xf32, #tpu.memory_space<vmem>>, vector<32x2xf32>,
    } else {
    }
    %c0 = arith.constant 0 : index
    %c0_1 = arith.constant 0 : index
    %3 = vector.load %arg3[%c0, %c0_1] : memref<32x4xf32, #tpu.memory_space<vmem>>, vector<32x4xf32>
    %c0_2 = arith.constant 0 : index
    %c0_3 = arith.constant 0 : index
    %c0_4 = arith.constant 0 : index
    %4 = vector.load %arg2[%c0_2, %c0_3, %c0_4] : memref<2x4x128xf32, #tpu.memory_space<vmem>>, vector<1x4x128xf32>
    %5 = vector.shape_cast %4 : vector<1x4x128xf32> to vector<4x128xf32>
    %cst = arith.constant dense<0.000000e+00> : vector<32x128xf32>
    %6 = tpu.matmul %3, %5, %cst {dimension_numbers = #tpu.dot_dimension_numbers<[1], [0], [0], [1], [0, 0, 1, 1], [], []>} : vector<32x4xf32>, vector<4x128xf32>, vector<32x128xf32> -> vector<32x128xf32>
    %cst_5 = arith.constant 0.000000e+00 : f32
    %7 = vector.broadcast %cst_5 : f32 to vector<32x128xf32>
    %8 = arith.maximumf %6, %7 : vector<32x128xf32>
    %cst_6 = arith.constant dense<0.000000e+00> : vector<32xf32>
    %9 = vector.multi_reduction <add>, %8, %cst_6 [1] : vector<32x128xf32> to vector<32xf32>
    %10 = vector.shape_cast %9 : vector<32xf32> to vector<32x1xf32>
    %c1 = arith.constant 1 : index
    %c0_7 = arith.constant 0 : index
    %c0_8 = arith.constant 0 : index
    %11 = vector.load %arg2[%c1, %c0_7, %c0_8] : memref<2x4x128xf32, #tpu.memory_space<vmem>>, vector<1x4x128xf32>
    %12 = vector.shape_cast %11 : vector<1x4x128xf32> to vector<4x128xf32>
    %cst_9 = arith.constant dense<0.000000e+00> : vector<32x128xf32>
    %13 = tpu.matmul %3, %12, %cst_9 {dimension_numbers = #tpu.dot_dimension_numbers<[1], [0], [0], [1], [0, 0, 1, 1], [], []>} : vector<32x4xf32>, vector<4x128xf32>, vector<32x128xf32> -> vector<32x128xf32>
    %cst_10 = arith.constant 0.000000e+00 : f32
    %14 = vector.broadcast %cst_10 : f32 to vector<32x128xf32>
    %15 = arith.maximumf %13, %14 : vector<32x128xf32>
    %cst_11 = arith.constant dense<0.000000e+00> : vector<32xf32>
    %16 = vector.multi_reduction <add>, %15, %cst_11 [1] : vector<32x128xf32> to vector<32xf32>
    %17 = vector.shape_cast %16 : vector<32xf32> to vector<32x1xf32>
    %c0_12 = arith.constant 0 : index
    %c0_13 = arith.constant 0 : index
    %18 = vector.load %arg5[%c0_12, %c0_13] : memref<32x2xf32, #tpu.memory_space<vmem>>, vector<32x2xf32>
    %19 = tpu.concatenate %10, %17 in 1 : vector<32x1xf32>, vector<32x1xf32> -> vector<32x2xf32>
    %20 = arith.addf %18, %19 : vector<32x2xf32>
    %c0_14 = arith.constant 0 : index
    %c0_15 = arith.constant 0 : index
    %21 = vector.load %arg5[%c0_14, %c0_15] : memref<32x2xf32, #tpu.memory_space<vmem>>, vector<32x2xf32>
    tpu.vector_store %arg5[%c0_14, %c0_15], %20 {strides = array<i32>} : memref<32x2xf32, #tpu.memory_space<vmem>>, vector<32x2xf32>,
    %c1_i32 = arith.constant 1 : i32
    %22 = arith.cmpi eq, %arg1, %c1_i32 : i32
    %23 = arith.extui %22 : i1 to i32
    %c0_i32_16 = arith.constant 0 : i32
    %24 = arith.cmpi ne, %23, %c0_i32_16 : i32
    scf.if %24 {
      %c0_17 = arith.constant 0 : index
      %c0_18 = arith.constant 0 : index
      %25 = vector.load %arg5[%c0_17, %c0_18] : memref<32x2xf32, #tpu.memory_space<vmem>>, vector<32x2xf32>
      %cst_19 = arith.constant 3.906250e-03 : f32
      %26 = vector.broadcast %cst_19 : f32 to vector<32x2xf32>
      %27 = arith.mulf %25, %26 : vector<32x2xf32>
      %c0_20 = arith.constant 0 : index
      %c0_21 = arith.constant 0 : index
      %28 = vector.load %arg4[%c0_20, %c0_21] : memref<32x2xf32, #tpu.memory_space<vmem>>, vector<32x2xf32>
      tpu.vector_store %arg4[%c0_20, %c0_21], %27 {strides = array<i32>} : memref<32x2xf32, #tpu.memory_space<vmem>>, vector<32x2xf32>,
    } else {
    }
    return
  }
  func.func @transform_0(%arg0: i32, %arg1: i32) -> (i32, i32, i32) {
    %c0_i32 = arith.constant 0 : i32
    %c0_i32_0 = arith.constant 0 : i32
    %c0_i32_1 = arith.constant 0 : i32
    return %c0_i32, %c0_i32_0, %arg1 : i32, i32, i32
  }
  func.func @transform_1(%arg0: i32, %arg1: i32) -> (i32, i32) {
    %c0_i32 = arith.constant 0 : i32
    %c0_i32_0 = arith.constant 0 : i32
    return %arg0, %c0_i32 : i32, i32
  }
  func.func @transform_2(%arg0: i32, %arg1: i32) -> (i32, i32) {
    %c0_i32 = arith.constant 0 : i32
    %c0_i32_0 = arith.constant 0 : i32
    return %arg0, %c0_i32 : i32, i32
  }
}

</mosaic_0001>

<bundles_post_ra>
// kernel: tpu_custom_call.1
= control target key start
LH: loop header
LB: loop body
LE: loop exit
PB: predicated region body
PF: predicated region fallthrough
CT: control target
= control target key end

     0   :  { %s721_s9 = smov 0   ;;  %s723_s10 = smov 0   ;;  %s820_s0 = inlined_call_operand.vmem [shape: f32[2,4,256], index: 0, kind: input, shape index: {}]   ;;  %s821_s1 = inlined_call_operand.vmem [shape: f32[32,4], index: 1, kind: input, shape index: {}]   ;;  %s822_s2 = inlined_call_operand.vmem [shape: f32[32,2], index: 2, kind: output, shape index: {}]  }
   0x1   :  { %s725_s11 = smov 0   ;;  %s727_s12 = smov 0  }
   0x2   :  { %s729_s13 = smov 0  }
   0x3 LB: > { %s21_s14 = sadd.s32 1, %s699_s12  ;;  %p38_p1 = scmp.ne.s32.totalorder %s691_s10, %s687_s9  ;;  %s703_s13 = sphi %s729_s13, %s12_s13   ;;  %s699_s12 = sphi %s727_s12, %s826_s12   ;;  %s695_s11 = sphi %s725_s11, %s825_s11   ;;  %s691_s10 = sphi %s723_s10, %s824_s10   ;;  %s687_s9 = sphi %s721_s9, %s823_s9  }
   0x4   : > { %p22_p0 = scmp.ge.s32.totalorder %s21_s14, 2  ;;  %p39_p2 = scmp.eq.s32.totalorder %s703_s13, 0 }
   0x5   : > { %s31_s16 = sadd.s32 1, %s691_s10  ;;  %p576_p5 = scmp.ge.s32.totalorder %s703_s13, 2 }
   0x6   : > { %s828_s14 = smov (%p22_p0, %s21_s14), 0  ;;  %p40_p3 = por %p39_p2, %p38_p1 }
   0x7   : > { %s28_s15 = ssub.s32 %s699_s12, %s828_s14  ;;  %125 = sbr.rel (%p576_p5) target bundleno = 17 (0x11), region = 20 }
   0x8   : > { %p29_p4 = scmp.eq.s32.totalorder %s28_s15, 0 }
   0xa   : > { %s756_s17 = scalar_select %p29_p4, %s691_s10, %s31_s16  }
   0xc   : > { %128 = sbr.rel (!%p40_p3) target bundleno = 17 (0x11), region = 24  ;;  %s130_s18 = sand.u32 (%p40_p3), 1, %s691_s10  }
   0xd   : > { %s578_s19 = sshll.u32 (%p40_p3), %s699_s12, 2  ;;  %s577_s20 = sshll.u32 (%p40_p3), %s130_s18, 3 }
   0xe   : > { %s134_s23 = scalar_lea.vmem (%p40_p3), %s820_s0, %s578_s19  ;;  %s132_s24 = scalar_lea.vmem (%p40_p3), [#allocation3], %s577_s20 }
   0xf   : > { %v151_v0 = vld [vmem:[%s134_s23] sm:$0xf] (%p40_p3)  ;;  %v153_v1 = vld [vmem:[%s134_s23 + $0x8] sm:$0xf] (%p40_p3) }
  0x10   : > { %152 = vst [vmem:[%s132_s24] sm:$0xf] (%p40_p3), %v151_v0  ;;  %154 = vst [vmem:[%s132_s24 + $0x4] sm:$0xf] (%p40_p3), %v153_v1 }
  0x11 PF: > { %p579_p6 = scmp.ge.s32.totalorder %s703_s13, 1  ;;  %p181_p7 = scmp.lt.s32.totalorder %s703_s13, 3 }
  0x13   : > { %p182_p8 = pnand %p579_p6, %p181_p7 }
  0x14   : > { %s188_s25 = sand.u32 (!%p182_p8), 1, %s687_s9   ;;  %p581_p9 = scmp.ne.s32.totalorder (!%p182_p8), %s695_s11, 0 }
  0x15   : > { %185 = sbr.rel (%p182_p8) target bundleno = 397 (0x18d), region = 65  ;;  %s580_s26 = sshll.u32 (!%p182_p8), %s188_s25, 3 }
  0x16   : > { %s190_s27 = scalar_lea.vmem (!%p182_p8), [#allocation3], %s580_s26 }
  0x1a   : > { %229 = sbr.rel (%p581_p9) target bundleno = 34 (0x22), region = 73 }
  0x1f   : > { %vm230_vm0 = vcmask 15360   ;;  %v705_v2 = vmov 0.0  }
  0x20   : > { %231 = vst.msk [vmem:[#allocation2] sm:$0xff] %vm230_vm0, %v705_v2  ;;  %232 = vst.msk [vmem:[#allocation2 + $0x8] sm:$0xff] %vm230_vm0, %v705_v2 }
  0x21   : > { %233 = vst.msk [vmem:[#allocation2 + $0x10] sm:$0xff] %vm230_vm0, %v705_v2  ;;  %234 = vst.msk [vmem:[#allocation2 + $0x18] sm:$0xff] %vm230_vm0, %v705_v2 }
  0x22 PF: > { %v239_v3 = vld [vmem:[%s190_s27] sm:$0xf]  ;;  %vm253_vm1 = vcmask 1043456   ;;  %v587_v4 = vld [vmem:[%s190_s27 + $0x4] sm:$0xf]  ;;  %vm240_vm2 = vcmask 31744  }
  0x23   : > { %v235_v5 = vld [vmem:[%s821_s1] sm:$0xff]  ;;  %608 = vmatprep.subr.msk.mxu0 %vm253_vm1, %v239_v3  ;;  %616 = vmatprep.subr.msk.mxu1 %vm253_vm1, %v587_v4  ;;  %v236_v6 = vld [vmem:[%s821_s1 + $0x8] sm:$0xff]  ;;  %v237_v7 = vld [vmem:[%s821_s1 + $0x10] sm:$0xff]  ;;  %vm460_vm3 = vcmask 7168   ;;  %vm469_vm4 = vcmask 15360   ;;  %p593_p10 = scmp.ne.s32.totalorder %s695_s11, 1 }
  0x24   : > { %609 = vmatpush3.msk.msra.mxu0 %vm253_vm1, %v239_v3  ;;  %610 = vmatprep.mubr.msk.f32.mxu0 %vm240_vm2, %v235_v5  ;;  %v238_v8 = vld [vmem:[%s821_s1 + $0x18] sm:$0xff] }
  0x25   : > { %617 = vmatpush3.msk.msra.mxu1 %vm253_vm1, %v587_v4  ;;  %618 = vmatprep.mubr.msk.f32.mxu1 %vm240_vm2, %v235_v5 }
  0x26   : > { %611 = vmatmul.mubr.msk.f32.vlgmr.msra.gmra.mxu0 %vm240_vm2, %v236_v6  ;;  %619 = vmatmul.mubr.msk.f32.vlgmr.msra.gmra.mxu1 %vm240_vm2, %v236_v6 }
  0x27   : > { %613 = vmatprep.mubr.msk.f32.mxu0 %vm240_vm2, %v237_v7  ;;  %621 = vmatprep.mubr.msk.f32.mxu1 %vm240_vm2, %v237_v7  ;;  %v457_v25 = vld [vmem:[#allocation2 + $0x8] sm:$0xff]  ;;  %v456_v32 = vld [vmem:[#allocation2] sm:$0xff] }
  0x28   : > { %v458_v37 = vld [vmem:[#allocation2 + $0x10] sm:$0xff]  ;;  %v459_v38 = vld [vmem:[#allocation2 + $0x18] sm:$0xff] }
  0x2a   : > { %614 = vmatmul.mubr.msk.f32.gmra.mxu0 %vm240_vm2, %v238_v8  ;;  %622 = vmatmul.mubr.msk.f32.gmra.mxu1 %vm240_vm2, %v238_v8 }
  0xe6   : > { %v612_v9 = vpop.f32.mrf.mxu0  ;;  %v620_v10 = vpop.f32.mrf.mxu1 }
  0xe7   : > { %v445_v11 = vmax.f32 %v620_v10, 0.0  ;;  %v343_v12 = vmax.f32 %v612_v9, 0.0 }
  0xe8   : > { %v323_v13 = vpop.f32.mrf.mxu0  ;;  %v425_v14 = vpop.f32.mrf.mxu1 }
  0xe9   : > { %450 = vadd.xlane.f32.xlu1 %v445_v11  ;;  %348 = vadd.xlane.f32.xlu0 %v343_v12  ;;  %v342_v16 = vmax.f32 %v323_v13, 0.0  ;;  %v444_v20 = vmax.f32 %v425_v14, 0.0 }
  0xea   : > { %v615_v15 = vpop.f32.mrf.mxu0  ;;  %v623_v19 = vpop.f32.mrf.mxu1 }
  0xeb   : > { %v345_v17 = vmax.f32 %v615_v15, 0.0  ;;  %v447_v23 = vmax.f32 %v623_v19, 0.0 }
  0xec   : > { %v333_v18 = vpop.f32.mrf.mxu0  ;;  %v435_v22 = vpop.f32.mrf.mxu1 }
  0xed   : > { %346 = vadd.xlane.f32.xlu0 %v342_v16  ;;  %352 = vadd.xlane.f32.xlu1 %v345_v17  ;;  %v344_v21 = vmax.f32 %v333_v18, 0.0  ;;  %v446_v24 = vmax.f32 %v435_v22, 0.0 }
  0xf1   : > { %448 = vadd.xlane.f32.xlu0 %v444_v20  ;;  %350 = vadd.xlane.f32.xlu1 %v344_v21 }
  0xf5   : > { %452 = vadd.xlane.f32.xlu0 %v446_v24  ;;  %454 = vadd.xlane.f32.xlu1 %v447_v23 }
 0x172   : > { %v451_v26 = vpop.xlane.xlu1 %450  ;;  %v349_v27 = vpop.xlane.xlu0 %348 }
 0x173   : > { %v462_v28 = vsel %vm460_vm3, %v349_v27, %v451_v26 }
 0x174   : > { %v466_v29 = vadd.f32 %v462_v28, %v457_v25 }
 0x176   : > { %471 = vst.msk [vmem:[#allocation2 + $0x8] sm:$0xff] %vm469_vm4, %v466_v29  ;;  %v347_v30 = vpop.xlane.xlu0 %346  ;;  %v353_v31 = vpop.xlane.xlu1 %352 }
 0x17a   : > { %v449_v33 = vpop.xlane.xlu0 %448  ;;  %v351_v34 = vpop.xlane.xlu1 %350 }
 0x17b   : > { %v461_v35 = vsel %vm460_vm3, %v347_v30, %v449_v33 }
 0x17c   : > { %v465_v36 = vadd.f32 %v461_v35, %v456_v32 }
 0x17e   : > { %470 = vst.msk [vmem:[#allocation2] sm:$0xff] %vm469_vm4, %v465_v36  ;;  %v453_v39 = vpop.xlane.xlu0 %452  ;;  %v455_v40 = vpop.xlane.xlu1 %454  ;;  %477 = sbr.rel (%p593_p10) target bundleno = 397 (0x18d), region = 77 }
 0x17f   : > { %v463_v41 = vsel %vm460_vm3, %v351_v34, %v453_v39  ;;  %v464_v42 = vsel %vm460_vm3, %v353_v31, %v455_v40 }
 0x180   : > { %v467_v43 = vadd.f32 %v463_v41, %v458_v37  ;;  %v468_v44 = vadd.f32 %v464_v42, %v459_v38 }
 0x182   : > { %472 = vst.msk [vmem:[#allocation2 + $0x10] sm:$0xff] %vm469_vm4, %v467_v43  ;;  %473 = vst.msk [vmem:[#allocation2 + $0x18] sm:$0xff] %vm469_vm4, %v468_v44 }
 0x183   : > { %v479_v46 = vld [vmem:[#allocation2 + $0x8] sm:$0xff] }
 0x184   : > { %v483_v49 = vmul.f32 0.00390625, %v479_v46 }
 0x185   : > { %v478_v45 = vld [vmem:[#allocation2] sm:$0xff] }
 0x186   : > { %v482_v48 = vmul.f32 0.00390625, %v478_v45  ;;  %487 = vst.msk [vmem:[%s822_s2 + $0x8] sm:$0xff] %vm469_vm4, %v483_v49 }
 0x188   : > { %486 = vst.msk [vmem:[%s822_s2] sm:$0xff] %vm469_vm4, %v482_v48 }
 0x189   : > { %v480_v47 = vld [vmem:[#allocation2 + $0x10] sm:$0xff]  ;;  %v481_v51 = vld [vmem:[#allocation2 + $0x18] sm:$0xff] }
 0x18a   : > { %v484_v50 = vmul.f32 0.00390625, %v480_v47  ;;  %v485_v52 = vmul.f32 0.00390625, %v481_v51 }
 0x18c   : > { %488 = vst.msk [vmem:[%s822_s2 + $0x10] sm:$0xff] %vm469_vm4, %v484_v50  ;;  %489 = vst.msk [vmem:[%s822_s2 + $0x18] sm:$0xff] %vm469_vm4, %v485_v52 }
 0x18d PF: > { %s12_s13 = sadd.s32 1, %s703_s13   ;;  %s823_s9 = smov %s691_s10 }
 0x18e   : > { %p9_p11 = scmp.ge.s32.totalorder %s12_s13, 4   ;;  %s824_s10 = smov %s756_s17 }
 0x18f   : > { %s825_s11 = smov %s699_s12  ;;  %s826_s12 = smov %s828_s14 }
 0x190   :  { %11 = sbr.rel (!%p9_p11) target bundleno = 3 (0x3), region = 116 }

</bundles_post_ra>
